<compile_context>
chip_gen: v5e
topology: v5e:2x2
jax: 0.10.0
libtpu: 0.0.40
codegen_flags: <defaults>
</compile_context>

<pallas_src>
from functools import partial
import random

import jax
import jax.numpy as jnp
from jax import lax
from jax.experimental import pallas as pl
from jax.experimental.pallas import tpu as pltpu


def _aug_kernel(params_ref, seed_ref, img_ref, out_ref, psum_ref, *,
                invert, brightness, contrast, noise,
                tz, m, z_total, mask_rows):
    """Photometric augmentation on one (tz, m) tile of the [Z, C*X*Y] slab.

    params (SMEM f32[3]): 0: brightness value  1: contrast value  2: noise gamma
    seed   (SMEM i32[1]): host seed for the hash-based uniform noise
    psum_ref: (1, 8, 128) VMEM tile holding this tile's (broadcast) partial sum.
    Gate flags and tile geometry are Python-static (kernel specialization).
    """
    img = img_ref[...].astype(jnp.float32)

    # _invert: image.sub_(255).mul_(-1)  ==  255 - image
    if invert:
        img = 255.0 - img

    # _brightness: image.add(val).clamp(0, 255)
    if brightness:
        img = jnp.clip(img + params_ref[0], 0.0, 255.0)

    # _contrast: image/255 -> ttf.adjust_contrast over (Z, C, X, Y) -> *255.
    # Single-channel semantics (C == 1): per-Z-slice mean over (C, X, Y),
    # blend ratio*img + (1-ratio)*mean, clamp to [0, 1].
    # TODO(synk): C == 3 would require torchvision's rgb_to_grayscale mean.
    if contrast:
        ct = params_ref[1]
        img01 = img * (1.0 / 255.0)
        zmean = jnp.mean(img01, axis=1, keepdims=True)   # per-row (per-Z) mean
        img = jnp.clip(ct * img01 + (1.0 - ct) * zmean, 0.0, 1.0) * 255.0

    # _noise: image + torch.rand(shape) * NOISE_GAMMA  (uniform [0, 1) noise).
    # Stateless lowbias32 hash of the absolute element index -> portable PRNG.
    if noise:
        gamma = params_ref[2]
        row = (lax.broadcasted_iota(jnp.int32, (tz, m), 0)
               + pl.program_id(0) * tz)
        col = lax.broadcasted_iota(jnp.int32, (tz, m), 1)
        h = (row * m + col).astype(jnp.uint32) ^ seed_ref[0].astype(jnp.uint32)
        h = (h ^ (h >> jnp.uint32(16))) * jnp.uint32(0x7FEB352D)
        h = (h ^ (h >> jnp.uint32(15))) * jnp.uint32(0x846CA68B)
        h = h ^ (h >> jnp.uint32(16))
        uni = ((h >> jnp.uint32(8)).astype(jnp.int32).astype(jnp.float32)
               * (1.0 / float(1 << 24)))                 # [0, 1)
        img = img + uni * gamma

    out_ref[...] = img

    # Partial sum for the global mean (_normalize); invalid padded rows of a
    # partial trailing tile are masked out of the reduction.
    if mask_rows:
        row = (lax.broadcasted_iota(jnp.int32, (tz, m), 0)
               + pl.program_id(0) * tz)
        img = jnp.where(row < z_total, img, 0.0)
    psum_ref[...] = jnp.broadcast_to(jnp.sum(img), psum_ref.shape)


def _choose_tz(Z, M, target_bytes=2 * 1024 * 1024):
    """Rows per tile: whole slab if small, else a multiple of 8 near ~2 MiB."""
    if Z * M * 4 <= target_bytes:
        return Z
    rows = max(8, (target_bytes // (M * 4)) // 8 * 8)
    return int(min(rows, Z))


def _run_aug_kernel(slab, br_val, ct_val, gamma, seed, *,
                    invert, brightness, contrast, noise):
    Z, M = slab.shape
    TZ = _choose_tz(Z, M)
    num_tiles = int(pl.cdiv(Z, TZ))
    mask_rows = (num_tiles * TZ != Z)

    params = jnp.stack([br_val, ct_val, gamma]).astype(jnp.float32)
    seed_arr = jnp.asarray(seed, jnp.int32).reshape(1)

    kernel = partial(
        _aug_kernel,
        invert=invert, brightness=brightness, contrast=contrast, noise=noise,
        tz=TZ, m=M, z_total=Z, mask_rows=mask_rows)

    out_img, psums = pl.pallas_call(
        kernel,
        out_shape=(
            jax.ShapeDtypeStruct((Z, M), jnp.float32),
            jax.ShapeDtypeStruct((num_tiles, 8, 128), jnp.float32),
        ),
        grid_spec=pltpu.PrefetchScalarGridSpec(
            num_scalar_prefetch=0,
            grid=(num_tiles,),
            in_specs=[
                pl.BlockSpec(memory_space=pltpu.MemorySpace.SMEM),   # params
                pl.BlockSpec(memory_space=pltpu.MemorySpace.SMEM),   # seed
                pl.BlockSpec((TZ, M), lambda i: (i, 0)),             # slab tile
            ],
            out_specs=(
                pl.BlockSpec((TZ, M), lambda i: (i, 0)),             # aug tile
                pl.BlockSpec((1, 8, 128), lambda i: (i, 0, 0)),      # partial sum
            ),
        ),
        compiler_params=pltpu.CompilerParams(
            dimension_semantics=("parallel",),
            vmem_limit_bytes=48 * 1024 * 1024),
        cost_estimate=pl.CostEstimate(
            flops=int(12 * Z * M),
            transcendentals=0,
            bytes_accessed=int(2 * Z * M * 4 + num_tiles * 8 * 128 * 4)),
    )(params, seed_arr, slab)
    return out_img, psums


@partial(jax.jit, static_argnames=("flip_x", "flip_y", "flip_z",
                                   "invert", "brightness", "contrast", "noise"))
def _device_forward(image, br_val, ct_val, gamma, seed, *,
                    flip_x, flip_y, flip_z,
                    invert, brightness, contrast, noise):
    """Device portion (flips + layout + kernel + normalize + mask) in one jit
    so XLA fuses the layout copies around the Pallas call."""
    C, X, Y, Z = image.shape
    axes = []
    if flip_x:
        axes.append(1)
    if flip_y:
        axes.append(2)
    if flip_z:
        axes.append(3)
    if axes:
        image = jnp.flip(image, axis=tuple(axes))

    slab = jnp.transpose(image, (3, 0, 1, 2)).reshape(Z, C * X * Y)
    slab = slab.astype(jnp.float32)

    aug, psums = _run_aug_kernel(
        slab, br_val, ct_val, gamma, seed,
        invert=invert, brightness=brightness, contrast=contrast, noise=noise)

    # _normalize: dataset_mean == 0 -> mean = image.mean(); dataset_std == 1 is
    # truthy in the reference, so std = 1 (no division).  The subtraction is
    # fused by XLA into the output transpose copy.
    mean = jnp.sum(psums[:, 0, 0]) / jnp.float32(Z * C * X * Y)
    img_out = (aug - mean).reshape(Z, C, X, Y).transpose(1, 2, 3, 0)

    # masks = torch.ones_like(image); crops/flips keep it all-ones and the
    # photometric ops never touch it -> produce with a cheap XLA broadcast.
    masks_out = jnp.ones_like(img_out)
    return img_out, masks_out


class BackgroundTransformFromCfgPallas:
    """JAX/Pallas re-implementation of BackgroundTransformFromCfg.forward."""

    def __init__(self, cfg):
        a = cfg["AUGMENTATION"]
        self.CROP_WIDTH = a["CROP_WIDTH"]
        self.CROP_HEIGHT = a["CROP_HEIGHT"]
        self.CROP_DEPTH = a["CROP_DEPTH"]
        self.FLIP_RATE = a["FLIP_RATE"]
        self.BRIGHTNESS_RATE = a["BRIGHTNESS_RATE"]
        self.BRIGHTNESS_RANGE = a["BRIGHTNESS_RANGE"]
        self.NOISE_GAMMA = a["NOISE_GAMMA"]
        self.NOISE_RATE = a["NOISE_RATE"]
        self.CONTRAST_RATE = a["CONTRAST_RATE"]
        self.CONTRAST_RANGE = a["CONTRAST_RANGE"]
        self.AFFINE_RATE = a["AFFINE_RATE"]
        self.ELASTIC_RATE = a["ELASTIC_RATE"]
        self.dataset_mean = 0
        self.dataset_std = 1

    def forward(self, data_dict, py_rng):
        image = data_dict["image"]            # [C, X, Y, Z], float32
        # masks = torch.ones_like(image); skeletons = {-1: None}  (background)

        # ------------------ _crop1 (background version) ------------------
        C, X, Y, Z = image.shape
        extra = 300
        w = self.CROP_WIDTH + extra if self.CROP_WIDTH + extra <= X else X
        h = self.CROP_HEIGHT + extra if self.CROP_HEIGHT + extra <= Y else Y
        d = self.CROP_DEPTH if self.CROP_DEPTH <= Z else Z
        x0 = py_rng.randint(0, X - w)
        y0 = py_rng.randint(0, Y - h)
        z0 = py_rng.randint(0, Z - d)
        image = image[:, x0:x0 + w, y0:y0 + h, z0:z0 + d]

        # ------------------ elastic / affine gates ------------------
        if py_rng.random() < self.ELASTIC_RATE:
            # TODO(synk): elastic_deform (F.grid_sample trilinear warp) has no
            # clean Pallas equivalent here; rate is 0 on the background path.
            pass
        if py_rng.random() < self.AFFINE_RATE:
            # TODO(synk): ttf.affine resampling warp not implemented; rate is 0
            # on the background path (skeletons == {-1: None}).
            pass

        # ------------------ _crop2 ------------------
        C, X, Y, Z = image.shape
        w = self.CROP_WIDTH if self.CROP_WIDTH < X else X
        h = self.CROP_HEIGHT if self.CROP_HEIGHT < Y else Y
        d = self.CROP_DEPTH if self.CROP_DEPTH < Z else Z
        # TODO(synk): parent _crop2 centers on self._center, which the
        # background _crop1 never sets (would raise in PyTorch); use the
        # volume center as the crop center instead.
        cx, cy, cz = X / 2.0, Y / 2.0, Z / 2.0
        x0 = int(min(max(cx - w // 2, 0), X - w))
        y0 = int(min(max(cy - h // 2, 0), Y - h))
        z0 = int(min(max(cz - d // 2, 0), Z - d))
        image = image[:, x0:x0 + w, y0:y0 + h, z0:z0 + d]

        # ------------------ host RNG gates (same call order as PyTorch) -------
        flip_x = py_rng.random() < self.FLIP_RATE
        flip_y = py_rng.random() < self.FLIP_RATE
        flip_z = py_rng.random() < self.FLIP_RATE
        # NOTE: the invert gate really is driven by BRIGHTNESS_RATE in the
        # original TransformFromCfg.forward().
        invert = py_rng.random() < self.BRIGHTNESS_RATE
        brightness = py_rng.random() < self.BRIGHTNESS_RATE
        br_val = py_rng.uniform(*self.BRIGHTNESS_RANGE) if brightness else 0.0
        contrast = py_rng.random() < self.CONTRAST_RATE
        ct_val = py_rng.uniform(*self.CONTRAST_RANGE) if contrast else 1.0
        noise = py_rng.random() < self.NOISE_RATE
        seed = py_rng.randint(0, 2 ** 31 - 1)

        # ------------------ device hot path (single jit) ------------------
        img_out, masks_out = _device_forward(
            image,
            jnp.asarray(br_val, jnp.float32),
            jnp.asarray(ct_val, jnp.float32),
            jnp.asarray(self.NOISE_GAMMA, jnp.float32),
            jnp.asarray(seed, jnp.int32),
            flip_x=flip_x, flip_y=flip_y, flip_z=flip_z,
            invert=invert, brightness=brightness,
            contrast=contrast, noise=noise)

        out = dict(data_dict)
        out["image"] = img_out
        out["masks"] = masks_out
        out["skeletons"] = {-1: None}
        # TODO(synk): bake_skeleton / skeleton_to_mask are not defined in the
        # provided source (and skeletons == {-1: None} here), so
        # 'baked_skeleton' / 'skele_masks' are not produced.
        return out


if __name__ == "__main__":
    cfg = {
        "AUGMENTATION": {
            "CROP_WIDTH": 16,
            "CROP_HEIGHT": 8,
            "CROP_DEPTH": 4,
            "FLIP_RATE": 0.5,
            "BRIGHTNESS_RATE": 0.5,
            "BRIGHTNESS_RANGE": (-10.0, 10.0),
            "NOISE_GAMMA": 0.1,
            "NOISE_RATE": 1.0,
            "CONTRAST_RATE": 0.5,
            "CONTRAST_RANGE": (0.5, 1.5),
            "AFFINE_RATE": 0.0,     # must be 0 on background path
            "ELASTIC_RATE": 0.0,    # must be 0 on background path
        }
    }

    key = jax.random.PRNGKey(0)
    # image volume [C, X, Y, Z] in [0, 255)
    image = jax.random.uniform(key, (1, 20, 16, 8), jnp.float32, 0.0, 255.0)

    tf = BackgroundTransformFromCfgPallas(cfg)
    py_rng = random.Random(0)  # deterministic host-side augmentation decisions

    out = tf.forward({"image": image}, py_rng)
    jax.block_until_ready((out["image"], out["masks"]))

    assert out["image"].shape == (1, 16, 8, 4)
    assert out["masks"].shape == (1, 16, 8, 4)
    assert bool(jnp.all(out["masks"] == 1.0))
    assert bool(jnp.isfinite(out["image"]).all())
    print("KERNEL_OK")
</pallas_src>

<mosaic_0001>
module attributes {stable_mosaic.version = 11 : i64} {
  func.func @_aug_kernel(%arg0: i32, %arg1: memref<3xf32, #tpu.memory_space<smem>>, %arg2: memref<1xi32, #tpu.memory_space<smem>>, %arg3: memref<4x128xf32, #tpu.memory_space<vmem>>, %arg4: memref<4x128xf32, #tpu.memory_space<vmem>>, %arg5: memref<1x8x128xf32, #tpu.memory_space<vmem>>) attributes {dimension_semantics = [#tpu.dimension_semantics<parallel>], iteration_bounds = array<i64: 1>, scalar_prefetch = 0 : i64, scratch_operands = 0 : i64, tpu.core_type = #tpu.core_type<tc>, window_params = [{transform_indices = @transform_0, window_bounds = array<i64: 3>}, {transform_indices = @transform_1, window_bounds = array<i64: 1>}, {transform_indices = @transform_2, window_bounds = array<i64: 4, 128>}, {transform_indices = @transform_3, window_bounds = array<i64: 4, 128>}, {transform_indices = @transform_4, window_bounds = array<i64: 1, 8, 128>}]} {
    %c0 = arith.constant 0 : index
    %c0_0 = arith.constant 0 : index
    %0 = vector.load %arg3[%c0, %c0_0] : memref<4x128xf32, #tpu.memory_space<vmem>>, vector<4x128xf32>
    %cst = arith.constant 2.550000e+02 : f32
    %1 = vector.broadcast %cst : f32 to vector<4x128xf32>
    %2 = arith.subf %1, %0 : vector<4x128xf32>
    %c2 = arith.constant 2 : index
    %3 = memref.load %arg1[%c2] : memref<3xf32, #tpu.memory_space<smem>>
    %4 = tpu.iota {dimensions = array<i32: 0>} : vector<4x128xi32>
    %c4_i32 = arith.constant 4 : i32
    %5 = arith.muli %arg0, %c4_i32 : i32
    %6 = vector.broadcast %5 : i32 to vector<4x128xi32>
    %7 = arith.addi %4, %6 : vector<4x128xi32>
    %8 = tpu.iota {dimensions = array<i32: 1>} : vector<4x128xi32>
    %c128_i32 = arith.constant 128 : i32
    %9 = vector.broadcast %c128_i32 : i32 to vector<4x128xi32>
    %10 = arith.muli %7, %9 : vector<4x128xi32>
    %11 = arith.addi %10, %8 : vector<4x128xi32>
    %c0_1 = arith.constant 0 : index
    %12 = memref.load %arg2[%c0_1] : memref<1xi32, #tpu.memory_space<smem>>
    %13 = vector.broadcast %12 : i32 to vector<4x128xi32>
    %14 = arith.xori %11, %13 : vector<4x128xi32>
    %c16_i32 = arith.constant 16 : i32
    %15 = vector.broadcast %c16_i32 : i32 to vector<4x128xi32>
    %16 = arith.shrui %14, %15 : vector<4x128xi32>
    %17 = arith.xori %14, %16 : vector<4x128xi32>
    %c2146121005_i32 = arith.constant 2146121005 : i32
    %18 = vector.broadcast %c2146121005_i32 : i32 to vector<4x128xi32>
    %19 = arith.muli %17, %18 : vector<4x128xi32>
    %c15_i32 = arith.constant 15 : i32
    %20 = vector.broadcast %c15_i32 : i32 to vector<4x128xi32>
    %21 = arith.shrui %19, %20 : vector<4x128xi32>
    %22 = arith.xori %19, %21 : vector<4x128xi32>
    %c-2073254261_i32 = arith.constant -2073254261 : i32
    %23 = vector.broadcast %c-2073254261_i32 : i32 to vector<4x128xi32>
    %24 = arith.muli %22, %23 : vector<4x128xi32>
    %c16_i32_2 = arith.constant 16 : i32
    %25 = vector.broadcast %c16_i32_2 : i32 to vector<4x128xi32>
    %26 = arith.shrui %24, %25 : vector<4x128xi32>
    %27 = arith.xori %24, %26 : vector<4x128xi32>
    %c8_i32 = arith.constant 8 : i32
    %28 = vector.broadcast %c8_i32 : i32 to vector<4x128xi32>
    %29 = arith.shrui %27, %28 : vector<4x128xi32>
    %30 = arith.sitofp %29 : vector<4x128xi32> to vector<4x128xf32>
    %cst_3 = arith.constant 5.96046448E-8 : f32
    %31 = vector.broadcast %cst_3 : f32 to vector<4x128xf32>
    %32 = arith.mulf %30, %31 : vector<4x128xf32>
    %33 = vector.broadcast %3 : f32 to vector<4x128xf32>
    %34 = arith.mulf %32, %33 : vector<4x128xf32>
    %35 = arith.addf %2, %34 : vector<4x128xf32>
    %c0_4 = arith.constant 0 : index
    %c0_5 = arith.constant 0 : index
    %36 = vector.load %arg4[%c0_4, %c0_5] : memref<4x128xf32, #tpu.memory_space<vmem>>, vector<4x128xf32>
    tpu.vector_store %arg4[%c0_4, %c0_5], %35 {strides = array<i32>} : memref<4x128xf32, #tpu.memory_space<vmem>>, vector<4x128xf32>,
    %37 = vector.shape_cast %35 : vector<4x128xf32> to vector<1x4x128xf32>
    %cst_6 = arith.constant dense<0.000000e+00> : vector<1xf32>
    %38 = vector.multi_reduction <add>, %37, %cst_6 [1, 2] : vector<1x4x128xf32> to vector<1xf32>
    %39 = vector.shape_cast %38 : vector<1xf32> to vector<1x1x1xf32>
    %40 = vector.extract %39[0, 0, 0] : f32 from vector<1x1x1xf32>
    %41 = vector.broadcast %40 : f32 to vector<1x8x128xf32>
    %c0_7 = arith.constant 0 : index
    %c0_8 = arith.constant 0 : index
    %c0_9 = arith.constant 0 : index
    %42 = vector.load %arg5[%c0_7, %c0_8, %c0_9] : memref<1x8x128xf32, #tpu.memory_space<vmem>>, vector<1x8x128xf32>
    tpu.vector_store %arg5[%c0_7, %c0_8, %c0_9], %41 {strides = array<i32>} : memref<1x8x128xf32, #tpu.memory_space<vmem>>, vector<1x8x128xf32>,
    return
  }
  func.func @transform_0(%arg0: i32) -> i32 {
    %c0_i32 = arith.constant 0 : i32
    %c0_i32_0 = arith.constant 0 : i32
    return %c0_i32 : i32
  }
  func.func @transform_1(%arg0: i32) -> i32 {
    %c0_i32 = arith.constant 0 : i32
    %c0_i32_0 = arith.constant 0 : i32
    return %c0_i32 : i32
  }
  func.func @transform_2(%arg0: i32) -> (i32, i32) {
    %c0_i32 = arith.constant 0 : i32
    %c0_i32_0 = arith.constant 0 : i32
    return %arg0, %c0_i32 : i32, i32
  }
  func.func @transform_3(%arg0: i32) -> (i32, i32) {
    %c0_i32 = arith.constant 0 : i32
    %c0_i32_0 = arith.constant 0 : i32
    return %arg0, %c0_i32 : i32, i32
  }
  func.func @transform_4(%arg0: i32) -> (i32, i32, i32) {
    %c0_i32 = arith.constant 0 : i32
    %c0_i32_0 = arith.constant 0 : i32
    %c0_i32_1 = arith.constant 0 : i32
    return %arg0, %c0_i32, %c0_i32_0 : i32, i32, i32
  }
}

</mosaic_0001>

<bundles_post_ra>
// kernel: _device_forward.1
= control target key start
LH: loop header
LB: loop body
LE: loop exit
PB: predicated region body
PF: predicated region fallthrough
CT: control target
= control target key end

     0   :  { %11 = vsyncpa [#allocation4], 0  ;;  %s100_s18 = smov [#allocation3]   ;;  %s141_s0 = inlined_call_operand.vmem [shape: f32[3], index: 0, kind: input, shape index: {}]   ;;  %s142_s1 = inlined_call_operand.<no memory space> [shape: s32[1], index: 1, kind: input, shape index: {}]   ;;  %s143_s2 = inlined_call_operand.vmem [shape: f32[4,128], index: 2, kind: input, shape index: {}]   ;;  %s144_s3 = inlined_call_operand.vmem [shape: f32[4,128], index: 3, kind: output, shape index: {0}]   ;;  %s145_s4 = inlined_call_operand.vmem [shape: f32[1,8,128], index: 4, kind: output, shape index: {1}]  }
   0x1   :  { %s17_s17 = sshll.u32 %s141_s0, 4  ;;  %s18_s17 = int_to_ptr.vmem [resolvable:$true] %s17_s17 }
   0x2   :  { %20 = dma.vmem_to_smem %s18_s17, 16, %s100_s18, [#allocation4]  }
   0x3   :  { %98 = dma.done.wait [#allocation4], 16  }
   0x4   :  { %99 = vsyncadd [#allocation4], 4294967280 }
   0x5   :  { %29 = sfence }
   0x6   :  { %v33_v0 = vlaneseq  ;;  %v43_v4 = vstv %s142_s1  ;;  %s82_s0 = sld [smem:[#allocation3 + $0x2]]  ;;  %v30_v16 = vld [vmem:[%s143_s2] sm:$0xf]  ;;  %vm60_vm0 = vcmask 1043456  }
   0x7   :  { %v31_v19 = vsub.f32 255.0, %v30_v16 }
   0x8   :  { %v34_v1 = vshrl.u32 %v33_v0, 7  ;;  %v39_v2 = vand.u32 127, %v33_v0 }
   0xa   :  { %v40_v3 = vmul.u32 128, %v34_v1 }
   0xc   :  { %v41_v5 = vadd.s32 %v40_v3, %v39_v2  ;;  %v56_v18 = vstv %s82_s0 }
   0xe   :  { %v44_v6 = vxor.u32 %v43_v4, %v41_v5 }
  0x10   :  { %v45_v7 = vshrl.u32 %v44_v6, 16 }
  0x12   :  { %v46_v8 = vxor.u32 %v45_v7, %v44_v6 }
  0x14   :  { %v47_v9 = vmul.u32 2146121005, %v46_v8 }
  0x16   :  { %v48_v10 = vshrl.u32 %v47_v9, 15 }
  0x18   :  { %v49_v11 = vxor.u32 %v48_v10, %v47_v9 }
  0x1a   :  { %v50_v12 = vmul.u32 2221713035, %v49_v11 }
  0x1c   :  { %v51_v13 = vshrl.u32 %v50_v12, 16 }
  0x1e   :  { %v52_v14 = vxor.u32 %v51_v13, %v50_v12 }
  0x20   :  { %v53_v15 = vshrl.u32 %v52_v14, 8 }
  0x22   :  { %v54_v17 = vcvt.s32.f32 %v53_v15 }
  0x24   :  { %v55_v20 = vmul.f32 5.9604645e-08, %v54_v17 }
  0x26   :  { %v57_v21 = vmul.f32 %v56_v18, %v55_v20 }
  0x28   :  { %v58_v22 = vadd.f32 %v57_v21, %v31_v19 }
  0x2a   :  { %59 = vst [vmem:[%s144_s3] sm:$0xf] %v58_v22  ;;  %v61_v23 = vsel %vm60_vm0, %v58_v22, 0.0 }
  0x2b   :  { %62 = vadd.xlane.f32.xlu0 %v61_v23 }
  0x9e   :  { %v63_v24 = vpop.xlane.xlu0 %62 }
  0x9f   :  { %v64_v25 = vrot.slane %v63_v24, 4 }
  0xa1   :  { %v65_v26 = vadd.f32 %v64_v25, %v63_v24 }
  0xa3   :  { %v66_v27 = vrot.slane %v65_v26, 2 }
  0xa5   :  { %v67_v28 = vadd.f32 %v66_v27, %v65_v26 }
  0xa7   :  { %v68_v29 = vrot.slane %v67_v28, 1 }
  0xa9   :  { %v69_v30 = vadd.f32 %v68_v29, %v67_v28 }
  0xab   :  { %83 = vpush %v69_v30 }
  0xdc   :  { %s84_s2 = spop %83 }
  0xdd   :  { %v71_v31 = vstv %s84_s2 }
  0xde   :  { %72 = vst [vmem:[%s145_s4] sm:$0xff] %v71_v31 }
  0xdf   :  { %81 = vsyncpa [#allocation4], 1 }

</bundles_post_ra>
